<compile_context>
chip_gen: v7x
topology: tpu7x:2x2x1
jax: 0.10.0
libtpu: 0.0.40
codegen_flags: <defaults>
</compile_context>

<pallas_src>
import functools
import math

import numpy as np
import jax
import jax.numpy as jnp
from jax import lax
from jax.experimental import pallas as pl
from jax.experimental.pallas import tpu as pltpu

F = 128            # lane width
CHUNK = 16         # rows per grid step (matches native bf16 sublane tile)
IN_DIM = 3
LATENT = 2
N_LAYERS = 8       # enc: 3->5, 5->10, 10->5, 5->4 | dec: 2->5, 5->10, 10->5, 5->3
WIN = 16           # lanes per layer window (max fan_in 10 + bias/carry row fits)
ONE = WIN - 1      # carry-1 position inside a window (row 15 / lane 15)
DEC0 = 4           # index of the decoder's first Linear
HEAD_WIN = 4       # encoder head output lands in window 4
MU_OFF = HEAD_WIN * WIN          # 64 : mu occupies lanes [64, 66)
LV_OFF = MU_OFF + LATENT         # 66 : logvar (and host-placed eps) lanes [66, 68)


def vae_kernel(slab_ref, w_ref, out_ref, *, batch):
    """slab_ref: (CHUNK,128) f32 = [x lanes 0:3 | carry-1 lane 15 | eps lanes 66:68].
    w_ref: (128,128) bf16 packed weight tile (VMEM-resident across the grid).
    out_ref: (CHUNK,128) f32 pre-weighted, masked loss contributions."""
    col = lax.broadcasted_iota(jnp.int32, (CHUNK, F), 1)
    row = lax.broadcasted_iota(jnp.int32, (CHUNK, F), 0)
    lv_lane = jnp.logical_and(col >= LV_OFF, col < LV_OFF + LATENT)

    slab = slab_ref[...]
    x = jnp.where(lv_lane, 0.0, slab)      # window-0 input only (x + carry-1 lane)
    eps = jnp.where(lv_lane, slab, 0.0)    # eps sits on the logvar lanes, 0 elsewhere

    w = w_ref[...]                         # bf16; fed directly to every MXU call

    def lin(h, relu):
        # bf16 x bf16 MXU pass, f32 accumulation; all other math stays f32.
        y = jnp.dot(h.astype(jnp.bfloat16), w, preferred_element_type=jnp.float32)
        return jnp.maximum(y, 0.0) if relu else y

    # ---- encoder ----
    h = lin(x, True)          # 3->5    window 0 -> 1
    h = lin(h, True)          # 5->10   window 1 -> 2
    h = lin(h, True)          # 10->5   window 2 -> 3
    head = lin(h, False)      # 5->4    window 3 -> 4: [mu | logvar], carry at lane 79

    # ---- reparameterize (no lane shift needed) ----
    std = jnp.exp(0.5 * head)              # lanes 66:68 hold exp(0.5*logvar)
    noise = eps * std                      # eps*std on lanes 66:68, exactly 0 elsewhere
    dec_in = jnp.where(lv_lane, noise, head)   # window 4 = [mu | eps*std | ... | 1]

    # ---- decoder (first block has duplicated rows -> consumes mu + eps*std) ----
    h = lin(dec_in, True)     # 2->5    window 4 -> 5
    h = lin(h, True)          # 5->10   window 5 -> 6
    h = lin(h, True)          # 10->5   window 6 -> 7
    x_hat = lin(h, False)     # 5->3    window 7 -> 0 (wraps): x_hat on lanes 0:3

    # ---- masked, pre-weighted per-element loss contributions ----
    g_row = row + pl.program_id(0) * CHUNK
    row_ok = g_row < batch
    diff = x - x_hat
    mse_t = jnp.where(jnp.logical_and(row_ok, col < IN_DIM), diff * diff, 0.0)

    # lanes [64,66): -mu^2 ; lanes [66,68): 1 + logvar - exp(logvar)  (exp(logvar)=std^2)
    kl_piece = jnp.where(col < LV_OFF, -(head * head), 1.0 + head - std * std)
    kl_mask = jnp.logical_and(
        row_ok, jnp.logical_and(col >= MU_OFF, col < MU_OFF + 2 * LATENT))
    kl_t = jnp.where(kl_mask, kl_piece, 0.0)

    c_rec = 1.0 / (batch * IN_DIM)                 # MSE mean over B*3
    c_kl = -0.5 * 0.05 / (batch * LATENT)          # 0.05 * (-0.5 * mean over B*latent)
    out_ref[...] = mse_t * c_rec + kl_t * c_kl     # lane-dense store; summed outside


def init_params(key):
    """PyTorch-style uniform(-1/sqrt(fan_in), 1/sqrt(fan_in)) init for all 8 Linears."""
    dims = [(3, 5), (5, 10), (10, 5), (5, 2 * LATENT),
            (LATENT, 5), (5, 10), (10, 5), (5, 3)]
    layers = []
    for fi, fo in dims:
        key, kw, kb = jax.random.split(key, 3)
        bound = 1.0 / math.sqrt(fi)
        W = jax.random.uniform(kw, (fi, fo), jnp.float32, -bound, bound)
        b = jax.random.uniform(kb, (fo,), jnp.float32, -bound, bound)
        layers.append((W, b))
    return layers


def pack_params(layers):
    """Pack all layers + biases into one (128,128) bf16 tile of 16-lane windows.
    Everything outside the designated blocks is exactly zero (asserted below)."""
    Wf = np.zeros((F, F), np.float32)
    allowed = np.zeros((F, F), bool)
    for i, (W, b) in enumerate(layers):
        W = np.asarray(W, np.float32)
        b = np.asarray(b, np.float32)
        fi, fo = W.shape
        r0 = i * WIN                        # input window (rows)
        c0 = ((i + 1) % N_LAYERS) * WIN     # output window (cols); layer 7 wraps to 0
        Wf[r0:r0 + fi, c0:c0 + fo] = W
        allowed[r0:r0 + fi, c0:c0 + fo] = True
        if i == DEC0:
            # duplicated rows: input lanes hold [mu | eps*std] -> W^T(mu+eps*std)+b
            Wf[r0 + LATENT:r0 + 2 * LATENT, c0:c0 + fo] = W
            allowed[r0 + LATENT:r0 + 2 * LATENT, c0:c0 + fo] = True
        Wf[r0 + ONE, c0:c0 + fo] = b        # bias row, fed by the carried constant-1 lane
        Wf[r0 + ONE, c0 + ONE] = 1.0        # propagate the carry-1 to the next window
        allowed[r0 + ONE, c0:c0 + fo] = True
        allowed[r0 + ONE, c0 + ONE] = True
    # Padding invariant guard (review correctness concern): nothing outside the
    # designated windows may be nonzero, or downstream layers silently corrupt.
    assert not np.any(Wf[~allowed]), "packed weight tile violates zero-padding invariant"
    return jnp.asarray(Wf, dtype=jnp.bfloat16)


def _vae_forward(x, eps, Wf):
    """x: (B,3) f32, eps: (B,latent) f32, Wf: (128,128) bf16 packed tile -> scalar loss."""
    B = x.shape[0]
    n_chunks = -(-B // CHUNK)
    rows = n_chunks * CHUNK

    # One fused slab: x on lanes 0:3, eps on the logvar lanes 66:68, constant-1 lane 15.
    slab = (jnp.zeros((rows, F), jnp.float32)
            .at[:B, :IN_DIM].set(x)
            .at[:B, LV_OFF:LV_OFF + LATENT].set(eps)
            .at[:, ONE].set(1.0))

    contrib = pl.pallas_call(
        functools.partial(vae_kernel, batch=B),
        out_shape=jax.ShapeDtypeStruct((rows, F), jnp.float32),
        grid_spec=pltpu.PrefetchScalarGridSpec(
            num_scalar_prefetch=0,
            grid=(n_chunks,),
            in_specs=[
                pl.BlockSpec((CHUNK, F), lambda i: (i, 0)),   # x/eps slab, streamed
                pl.BlockSpec((F, F), lambda i: (0, 0)),       # weights, VMEM-resident
            ],
            out_specs=pl.BlockSpec((CHUNK, F), lambda i: (i, 0)),
        ),
        compiler_params=pltpu.CompilerParams(
            dimension_semantics=("parallel",)),               # v7x: chunks split across TCs
    )(slab, Wf)
    return jnp.sum(contrib)                                   # tiny fused reduction


vae_forward = jax.jit(_vae_forward)


def vae_forward_ref(x, eps, layers):
    """Pure-JAX reference mirroring the PyTorch forward with the kernel's numerics:
    bf16 dot operands, f32 accumulation/elementwise, same decoder duplicated-row path."""
    def bdot(h, Wb):
        return jnp.dot(h.astype(jnp.bfloat16), Wb, preferred_element_type=jnp.float32)

    eff = [(W.astype(jnp.bfloat16),
            b.astype(jnp.bfloat16).astype(jnp.float32)) for W, b in layers]

    h = x
    for i in range(3):
        Wb, b = eff[i]
        h = jnp.maximum(bdot(h, Wb) + b, 0.0)
    Wb, b = eff[3]
    he = bdot(h, Wb) + b
    mu, logvar = he[:, :LATENT], he[:, LATENT:]
    std = jnp.exp(0.5 * logvar)

    # decoder first layer mirrors the kernel's duplicated-row trick:
    Wb, b = eff[4]
    h = jnp.maximum(bdot(mu, Wb) + bdot(eps * std, Wb) + b, 0.0)
    for i in range(5, 7):
        Wb, b = eff[i]
        h = jnp.maximum(bdot(h, Wb) + b, 0.0)
    Wb, b = eff[7]
    x_hat = bdot(h, Wb) + b

    rec = jnp.mean((x - x_hat) ** 2)
    kl = -0.5 * jnp.mean(1.0 + logvar - mu ** 2 - std * std)
    return rec + 0.05 * kl


if __name__ == "__main__":
    key = jax.random.PRNGKey(0)
    k_params, k_x, k_eps = jax.random.split(key, 3)

    layers = init_params(k_params)
    Wf = pack_params(layers)

    B = 20   # spans two 16-row chunks -> exercises the grid, weight residency, masking
    x = jax.random.normal(k_x, (B, IN_DIM), jnp.float32)
    # eps plays the role of torch.randn_like(std); drawn once, shared with the reference
    eps = jax.random.normal(k_eps, (B, LATENT), jnp.float32)

    loss = jax.block_until_ready(vae_forward(x, eps, Wf))
    ref = jax.block_until_ready(vae_forward_ref(x, eps, layers))

    assert jnp.allclose(loss, ref, rtol=2e-4, atol=2e-5), (loss, ref)
    print("KERNEL_OK")
</pallas_src>

<mosaic_0001>
module attributes {stable_mosaic.version = 11 : i64} {
  func.func @vae_kernel(%arg0: i32, %arg1: memref<16x128xf32, #tpu.memory_space<vmem>>, %arg2: memref<128x128xbf16, #tpu.memory_space<vmem>>, %arg3: memref<16x128xf32, #tpu.memory_space<vmem>>) attributes {dimension_semantics = [#tpu.dimension_semantics<parallel>], iteration_bounds = array<i64: 2>, scalar_prefetch = 0 : i64, scratch_operands = 0 : i64, tpu.core_type = #tpu.core_type<tc>, window_params = [{transform_indices = @transform_0, window_bounds = array<i64: 16, 128>}, {pipeline_mode = #tpu.pipeline_mode<synchronous>, transform_indices = @transform_1, window_bounds = array<i64: 128, 128>}, {transform_indices = @transform_2, window_bounds = array<i64: 16, 128>}]} {
    %0 = tpu.iota {dimensions = array<i32: 1>} : vector<16x128xi32>
    %1 = tpu.iota {dimensions = array<i32: 0>} : vector<16x128xi32>
    %c66_i32 = arith.constant 66 : i32
    %2 = vector.broadcast %c66_i32 : i32 to vector<16x128xi32>
    %3 = arith.cmpi sge, %0, %2 : vector<16x128xi32>
    %c68_i32 = arith.constant 68 : i32
    %4 = vector.broadcast %c68_i32 : i32 to vector<16x128xi32>
    %5 = arith.cmpi slt, %0, %4 : vector<16x128xi32>
    %6 = arith.andi %3, %5 : vector<16x128xi1>
    %c0 = arith.constant 0 : index
    %c0_0 = arith.constant 0 : index
    %7 = vector.load %arg1[%c0, %c0_0] : memref<16x128xf32, #tpu.memory_space<vmem>>, vector<16x128xf32>
    %cst = arith.constant 0.000000e+00 : f32
    %8 = vector.broadcast %cst : f32 to vector<16x128xf32>
    %9 = arith.select %6, %8, %7 : vector<16x128xi1>, vector<16x128xf32>
    %cst_1 = arith.constant 0.000000e+00 : f32
    %10 = vector.broadcast %cst_1 : f32 to vector<16x128xf32>
    %11 = arith.select %6, %7, %10 : vector<16x128xi1>, vector<16x128xf32>
    %c0_2 = arith.constant 0 : index
    %c0_3 = arith.constant 0 : index
    %12 = vector.load %arg2[%c0_2, %c0_3] : memref<128x128xbf16, #tpu.memory_space<vmem>>, vector<128x128xbf16>
    %13 = arith.truncf %9 : vector<16x128xf32> to vector<16x128xbf16>
    %cst_4 = arith.constant dense<0.000000e+00> : vector<16x128xf32>
    %14 = tpu.matmul %13, %12, %cst_4 {dimension_numbers = #tpu.dot_dimension_numbers<[1], [0], [0], [1], [0, 0, 1, 1], [], []>} : vector<16x128xbf16>, vector<128x128xbf16>, vector<16x128xf32> -> vector<16x128xf32>
    %cst_5 = arith.constant 0.000000e+00 : f32
    %15 = vector.broadcast %cst_5 : f32 to vector<16x128xf32>
    %16 = arith.maximumf %14, %15 : vector<16x128xf32>
    %17 = arith.truncf %16 : vector<16x128xf32> to vector<16x128xbf16>
    %cst_6 = arith.constant dense<0.000000e+00> : vector<16x128xf32>
    %18 = tpu.matmul %17, %12, %cst_6 {dimension_numbers = #tpu.dot_dimension_numbers<[1], [0], [0], [1], [0, 0, 1, 1], [], []>} : vector<16x128xbf16>, vector<128x128xbf16>, vector<16x128xf32> -> vector<16x128xf32>
    %cst_7 = arith.constant 0.000000e+00 : f32
    %19 = vector.broadcast %cst_7 : f32 to vector<16x128xf32>
    %20 = arith.maximumf %18, %19 : vector<16x128xf32>
    %21 = arith.truncf %20 : vector<16x128xf32> to vector<16x128xbf16>
    %cst_8 = arith.constant dense<0.000000e+00> : vector<16x128xf32>
    %22 = tpu.matmul %21, %12, %cst_8 {dimension_numbers = #tpu.dot_dimension_numbers<[1], [0], [0], [1], [0, 0, 1, 1], [], []>} : vector<16x128xbf16>, vector<128x128xbf16>, vector<16x128xf32> -> vector<16x128xf32>
    %cst_9 = arith.constant 0.000000e+00 : f32
    %23 = vector.broadcast %cst_9 : f32 to vector<16x128xf32>
    %24 = arith.maximumf %22, %23 : vector<16x128xf32>
    %25 = arith.truncf %24 : vector<16x128xf32> to vector<16x128xbf16>
    %cst_10 = arith.constant dense<0.000000e+00> : vector<16x128xf32>
    %26 = tpu.matmul %25, %12, %cst_10 {dimension_numbers = #tpu.dot_dimension_numbers<[1], [0], [0], [1], [0, 0, 1, 1], [], []>} : vector<16x128xbf16>, vector<128x128xbf16>, vector<16x128xf32> -> vector<16x128xf32>
    %cst_11 = arith.constant 5.000000e-01 : f32
    %27 = vector.broadcast %cst_11 : f32 to vector<16x128xf32>
    %28 = arith.mulf %27, %26 : vector<16x128xf32>
    %29 = math.exp %28 : vector<16x128xf32>
    %30 = arith.mulf %11, %29 : vector<16x128xf32>
    %31 = arith.select %6, %30, %26 : vector<16x128xi1>, vector<16x128xf32>
    %32 = arith.truncf %31 : vector<16x128xf32> to vector<16x128xbf16>
    %cst_12 = arith.constant dense<0.000000e+00> : vector<16x128xf32>
    %33 = tpu.matmul %32, %12, %cst_12 {dimension_numbers = #tpu.dot_dimension_numbers<[1], [0], [0], [1], [0, 0, 1, 1], [], []>} : vector<16x128xbf16>, vector<128x128xbf16>, vector<16x128xf32> -> vector<16x128xf32>
    %cst_13 = arith.constant 0.000000e+00 : f32
    %34 = vector.broadcast %cst_13 : f32 to vector<16x128xf32>
    %35 = arith.maximumf %33, %34 : vector<16x128xf32>
    %36 = arith.truncf %35 : vector<16x128xf32> to vector<16x128xbf16>
    %cst_14 = arith.constant dense<0.000000e+00> : vector<16x128xf32>
    %37 = tpu.matmul %36, %12, %cst_14 {dimension_numbers = #tpu.dot_dimension_numbers<[1], [0], [0], [1], [0, 0, 1, 1], [], []>} : vector<16x128xbf16>, vector<128x128xbf16>, vector<16x128xf32> -> vector<16x128xf32>
    %cst_15 = arith.constant 0.000000e+00 : f32
    %38 = vector.broadcast %cst_15 : f32 to vector<16x128xf32>
    %39 = arith.maximumf %37, %38 : vector<16x128xf32>
    %40 = arith.truncf %39 : vector<16x128xf32> to vector<16x128xbf16>
    %cst_16 = arith.constant dense<0.000000e+00> : vector<16x128xf32>
    %41 = tpu.matmul %40, %12, %cst_16 {dimension_numbers = #tpu.dot_dimension_numbers<[1], [0], [0], [1], [0, 0, 1, 1], [], []>} : vector<16x128xbf16>, vector<128x128xbf16>, vector<16x128xf32> -> vector<16x128xf32>
    %cst_17 = arith.constant 0.000000e+00 : f32
    %42 = vector.broadcast %cst_17 : f32 to vector<16x128xf32>
    %43 = arith.maximumf %41, %42 : vector<16x128xf32>
    %44 = arith.truncf %43 : vector<16x128xf32> to vector<16x128xbf16>
    %cst_18 = arith.constant dense<0.000000e+00> : vector<16x128xf32>
    %45 = tpu.matmul %44, %12, %cst_18 {dimension_numbers = #tpu.dot_dimension_numbers<[1], [0], [0], [1], [0, 0, 1, 1], [], []>} : vector<16x128xbf16>, vector<128x128xbf16>, vector<16x128xf32> -> vector<16x128xf32>
    %c16_i32 = arith.constant 16 : i32
    %46 = arith.muli %arg0, %c16_i32 : i32
    %47 = vector.broadcast %46 : i32 to vector<16x128xi32>
    %48 = arith.addi %1, %47 : vector<16x128xi32>
    %c20_i32 = arith.constant 20 : i32
    %49 = vector.broadcast %c20_i32 : i32 to vector<16x128xi32>
    %50 = arith.cmpi slt, %48, %49 : vector<16x128xi32>
    %51 = arith.subf %9, %45 : vector<16x128xf32>
    %c3_i32 = arith.constant 3 : i32
    %52 = vector.broadcast %c3_i32 : i32 to vector<16x128xi32>
    %53 = arith.cmpi slt, %0, %52 : vector<16x128xi32>
    %54 = arith.andi %50, %53 : vector<16x128xi1>
    %55 = arith.mulf %51, %51 : vector<16x128xf32>
    %cst_19 = arith.constant 0.000000e+00 : f32
    %56 = vector.broadcast %cst_19 : f32 to vector<16x128xf32>
    %57 = arith.select %54, %55, %56 : vector<16x128xi1>, vector<16x128xf32>
    %c66_i32_20 = arith.constant 66 : i32
    %58 = vector.broadcast %c66_i32_20 : i32 to vector<16x128xi32>
    %59 = arith.cmpi slt, %0, %58 : vector<16x128xi32>
    %60 = arith.mulf %26, %26 : vector<16x128xf32>
    %cst_21 = arith.constant 0.000000e+00 : f32
    %61 = vector.broadcast %cst_21 : f32 to vector<16x128xf32>
    %62 = arith.subf %61, %60 : vector<16x128xf32>
    %cst_22 = arith.constant 1.000000e+00 : f32
    %63 = vector.broadcast %cst_22 : f32 to vector<16x128xf32>
    %64 = arith.addf %63, %26 : vector<16x128xf32>
    %65 = arith.mulf %29, %29 : vector<16x128xf32>
    %66 = arith.subf %64, %65 : vector<16x128xf32>
    %67 = arith.select %59, %62, %66 : vector<16x128xi1>, vector<16x128xf32>
    %c64_i32 = arith.constant 64 : i32
    %68 = vector.broadcast %c64_i32 : i32 to vector<16x128xi32>
    %69 = arith.cmpi sge, %0, %68 : vector<16x128xi32>
    %c68_i32_23 = arith.constant 68 : i32
    %70 = vector.broadcast %c68_i32_23 : i32 to vector<16x128xi32>
    %71 = arith.cmpi slt, %0, %70 : vector<16x128xi32>
    %72 = arith.andi %69, %71 : vector<16x128xi1>
    %73 = arith.andi %50, %72 : vector<16x128xi1>
    %cst_24 = arith.constant 0.000000e+00 : f32
    %74 = vector.broadcast %cst_24 : f32 to vector<16x128xf32>
    %75 = arith.select %73, %67, %74 : vector<16x128xi1>, vector<16x128xf32>
    %cst_25 = arith.constant 0.0166666675 : f32
    %76 = vector.broadcast %cst_25 : f32 to vector<16x128xf32>
    %77 = arith.mulf %57, %76 : vector<16x128xf32>
    %cst_26 = arith.constant -6.250000e-04 : f32
    %78 = vector.broadcast %cst_26 : f32 to vector<16x128xf32>
    %79 = arith.mulf %75, %78 : vector<16x128xf32>
    %80 = arith.addf %77, %79 : vector<16x128xf32>
    %c0_27 = arith.constant 0 : index
    %c0_28 = arith.constant 0 : index
    %81 = vector.load %arg3[%c0_27, %c0_28] : memref<16x128xf32, #tpu.memory_space<vmem>>, vector<16x128xf32>
    tpu.vector_store %arg3[%c0_27, %c0_28], %80 {strides = array<i32>} : memref<16x128xf32, #tpu.memory_space<vmem>>, vector<16x128xf32>,
    return
  }
  func.func @transform_0(%arg0: i32) -> (i32, i32) {
    %c0_i32 = arith.constant 0 : i32
    %c0_i32_0 = arith.constant 0 : i32
    return %arg0, %c0_i32 : i32, i32
  }
  func.func @transform_1(%arg0: i32) -> (i32, i32) {
    %c0_i32 = arith.constant 0 : i32
    %c0_i32_0 = arith.constant 0 : i32
    %c0_i32_1 = arith.constant 0 : i32
    return %c0_i32, %c0_i32_0 : i32, i32
  }
  func.func @transform_2(%arg0: i32) -> (i32, i32) {
    %c0_i32 = arith.constant 0 : i32
    %c0_i32_0 = arith.constant 0 : i32
    return %arg0, %c0_i32 : i32, i32
  }
}

</mosaic_0001>

<bundles_post_ra>
// kernel: _vae_forward.1
= control target key start
LH: loop header
LB: loop body
LE: loop exit
PB: predicated region body
PF: predicated region fallthrough
CT: control target
= control target key end

     0   :  { %s986_s9 = smov 0   ;;  %s1257_s0 = inlined_call_operand.vmem [shape: f32[32,128], index: 0, kind: input, shape index: {}]   ;;  %s1258_s1 = inlined_call_operand.vmem [shape: bf16[128,128], index: 1, kind: input, shape index: {}]   ;;  %s1259_s2 = inlined_call_operand.vmem [shape: f32[32,128], index: 2, kind: output, shape index: {}]  }
   0x1 LB: > { %s682_s10 = sadd.s32 4294967295, %s967_s9   ;;  %p686_p0 = scmp.ge.s32.totalorder %s967_s9, 1  ;;  %s967_s9 = sphi %s986_s9, %s12_s9  }
   0x2   : > { %p113_p1 = scmp.lt.s32.totalorder %s967_s9, 3 }
   0x4   : > { %p114_p2 = pnand %p686_p0, %p113_p1 }
   0x5   : > { %v997_v0 = vld [vmem:[%s1258_s1] sm:$0xff] (!%p114_p2)   ;;  %v969_v1 = vmov (!%p114_p2), 0.0   ;;  %v1005_v2 = vld [vmem:[%s1258_s1 + $0x8] sm:$0xff] (!%p114_p2)   ;;  %vm970_vm0 = vmmov (!%p114_p2), 0   ;;  %v1018_v3 = vld [vmem:[%s1258_s1 + $0x10] sm:$0xff] (!%p114_p2)   ;;  %s687_s17 = sshll.u32 (!%p114_p2), %s682_s10, 1  ;;  %v148_v5 = vlaneseq (!%p114_p2) }
   0x6   : > { %117 = sbr.rel (%p114_p2) target bundleno = 1804 (0x70c), region = 28  ;;  %779 = vmatprep.subr.bf16.mxu0 (!%p114_p2), %v969_v1  ;;  %799 = vmatprep.subr.bf16.mxu1 (!%p114_p2), %v969_v1  ;;  %v1029_v4 = vld [vmem:[%s1258_s1 + $0x18] sm:$0xff] (!%p114_p2)   ;;  %p136_p3 = scmp.lt.s32.totalorder (!%p114_p2), %s687_s17, 3  ;;  %v1038_v6 = vld [vmem:[%s1258_s1 + $0x20] sm:$0xff] (!%p114_p2)   ;;  %v1052_v8 = vld [vmem:[%s1258_s1 + $0x28] sm:$0xff] (!%p114_p2)  }
   0x7   : > { %780 = vmatpush3.bf16.msra.mxu0 (!%p114_p2), %v997_v0  ;;  %795 = vmatprep.mubr.msk.bf16.mxu0 (!%p114_p2), %vm970_vm0, %v969_v1  ;;  %v1046_v7 = vand.u32 (!%p114_p2), 127, %v148_v5  ;;  %v1064_v9 = vld [vmem:[%s1258_s1 + $0x30] sm:$0xff] (!%p114_p2)   ;;  %v1084_v11 = vld [vmem:[%s1258_s1 + $0x38] sm:$0xff] (!%p114_p2)   ;;  %s704_s4 = sshll.u32 (!%p114_p2), %s682_s10, 4 }
   0x8   : > { %781 = vmatprep.subr.bf16.mxu0 (!%p114_p2), %v969_v1  ;;  %800 = vmatpush3.bf16.msra.mxu1 (!%p114_p2), %v997_v0 }
   0x9   : > { %801 = vmatprep.subr.bf16.mxu1 (!%p114_p2), %v969_v1  ;;  %815 = vmatprep.mubr.msk.bf16.mxu1 (!%p114_p2), %vm970_vm0, %v969_v1  ;;  %vm153_vm1 = vcmp.ge.s32.totalorder (!%p114_p2), %v1046_v7, 66  ;;  %vm154_vm2 = vcmp.lt.s32.totalorder (!%p114_p2), %v1046_v7, 68  ;;  %vm599_vm6 = vcmp.lt.s32.totalorder (!%p114_p2), %v1046_v7, 66  ;;  %vm612_vm7 = vcmp.ge.s32.totalorder (!%p114_p2), %v1046_v7, 64 }
   0xa   : > { %vm1075_vm3 = vmand (!%p114_p2), %vm153_vm1, %vm154_vm2  ;;  %vm592_vm11 = vcmp.lt.s32.totalorder (!%p114_p2), %v1046_v7, 3 }
   0xb   : > { %782 = vmatpush3.bf16.msra.mxu0 (!%p114_p2), %v1005_v2  ;;  %vm699_vm4 = vmneg (!%p114_p2), %vm1075_vm3 }
   0xc   : > { %783 = vmatprep.subr.bf16.mxu0 (!%p114_p2), %v969_v1  ;;  %802 = vmatpush3.bf16.msra.mxu1 (!%p114_p2), %v1005_v2  ;;  %vm701_vm5 = vmpackc.low (!%p114_p2), %vm699_vm4, %vm699_vm4 }
   0xd   : > { %803 = vmatprep.subr.bf16.mxu1 %v969_v1  ;;  %s1267_s17 = smov (!%p136_p3, %s687_s17), 3  ;;  %vm613_vm9 = vmand %vm612_vm7, %vm154_vm2 }
   0xe   : > { %s688_s24 = sshll.u32 %s1267_s17, 3 }
   0xf   : > { %784 = vmatpush3.bf16.msra.mxu0 %v1018_v3  ;;  %s139_s29 = scalar_lea.vmem %s1257_s0, %s688_s24  ;;  %s145_s7 = scalar_lea.vmem %s1259_s2, %s688_s24 }
  0x10   : > { %785 = vmatprep.subr.bf16.mxu0 %v969_v1  ;;  %804 = vmatpush3.bf16.msra.mxu1 %v1018_v3  ;;  %v1086_v12 = vld [vmem:[%s139_s29] sm:$0xff]  ;;  %v1088_v13 = vld [vmem:[%s139_s29 + $0x8] sm:$0xff] }
  0x11   : > { %805 = vmatprep.subr.bf16.mxu1 %v969_v1  ;;  %v702_v14 = vpack.c.bf16 %v1088_v13, %v1086_v12  ;;  %v160_v44 = vsel %vm1075_vm3, %v1086_v12, 0.0  ;;  %v161_v47 = vsel %vm1075_vm3, %v1088_v13, 0.0 }
  0x13   : > { %786 = vmatpush3.bf16.msra.mxu0 %v1029_v4 }
  0x14   : > { %787 = vmatprep.subr.bf16.mxu0 %v969_v1  ;;  %806 = vmatpush3.bf16.msra.mxu1 %v1029_v4 }
  0x15   : > { %807 = vmatprep.subr.bf16.mxu1 %v969_v1 }
  0x17   : > { %788 = vmatpush3.bf16.msra.mxu0 %v1038_v6 }
  0x18   : > { %789 = vmatprep.subr.bf16.mxu0 %v969_v1  ;;  %808 = vmatpush3.bf16.msra.mxu1 %v1038_v6 }
  0x19   : > { %809 = vmatprep.subr.bf16.mxu1 %v969_v1 }
  0x1b   : > { %790 = vmatpush3.bf16.msra.mxu0 %v1052_v8 }
  0x1c   : > { %791 = vmatprep.subr.bf16.mxu0 %v969_v1  ;;  %810 = vmatpush3.bf16.msra.mxu1 %v1052_v8 }
  0x1d   : > { %811 = vmatprep.subr.bf16.mxu1 %v969_v1 }
  0x1f   : > { %792 = vmatpush3.bf16.msra.mxu0 %v1064_v9 }
  0x20   : > { %793 = vmatprep.subr.bf16.mxu0 %v969_v1  ;;  %812 = vmatpush3.bf16.msra.mxu1 %v1064_v9 }
  0x21   : > { %813 = vmatprep.subr.bf16.mxu1 %v969_v1 }
  0x23   : > { %794 = vmatpush3.bf16.msra.mxu0 %v1084_v11 }
  0x24   : > { %814 = vmatpush3.bf16.msra.mxu1 %v1084_v11  ;;  %819 = vmatprep.subr.bf16.mxu0 %v969_v1 }
  0x25   : > { %839 = vmatprep.subr.bf16.mxu1 %v969_v1 }
  0x26   : > { %796 = vmatmul.mubr.msk.bf16.vlgmr.msra.gmra.mrb[0].mxu0 %vm701_vm5, %v702_v14 }
  0x27   : > { %820 = vmatpush3.bf16.msra.mxu0 %v997_v0  ;;  %835 = vmatprep.mubr.msk.bf16.mxu0 %vm970_vm0, %v969_v1 }
  0x28   : > { %821 = vmatprep.subr.bf16.mxu0 %v969_v1 }
  0x2b   : > { %822 = vmatpush3.bf16.msra.mxu0 %v1005_v2 }
  0x2c   : > { %823 = vmatprep.subr.bf16.mxu0 %v969_v1 }
  0x2f   : > { %824 = vmatpush3.bf16.msra.mxu0 %v1018_v3 }
  0x30   : > { %825 = vmatprep.subr.bf16.mxu0 %v969_v1 }
  0x33   : > { %826 = vmatpush3.bf16.msra.mxu0 %v1029_v4 }
  0x34   : > { %827 = vmatprep.subr.bf16.mxu0 %v969_v1 }
  0x37   : > { %828 = vmatpush3.bf16.msra.mxu0 %v1038_v6 }
  0x38   : > { %829 = vmatprep.subr.bf16.mxu0 %v969_v1 }
  0x3b   : > { %830 = vmatpush3.bf16.msra.mxu0 %v1052_v8 }
  0x3c   : > { %831 = vmatprep.subr.bf16.mxu0 %v969_v1 }
  0x3f   : > { %832 = vmatpush3.bf16.msra.mxu0 %v1064_v9 }
  0x40   : > { %833 = vmatprep.subr.bf16.mxu0 %v969_v1 }
  0x43   : > { %834 = vmatpush3.bf16.msra.mxu0 %v1084_v11 }
  0x44   : > { %859 = vmatprep.subr.bf16.mxu0 %v969_v1 }
  0xf9   : > { %v261_v15 = vpop.f32.mrb[0].mxu0 }
  0xfa   : > { %v797_v16 = vpop.f32.mrb[1].mxu0  ;;  %v268_v18 = vmax.f32 %v261_v15, 0.0 }
  0xfb   : > { %v264_v17 = vpop.f32.mrb[2].mxu0 }
  0xfc   : > { %v269_v19 = vmax.f32 %v264_v17, 0.0  ;;  %v798_v20 = vpop.f32.mrb[3].mxu0 }
  0xfe   : > { %v270_v21 = vpack.c.bf16 %v269_v19, %v268_v18 }
 0x100   : > { %816 = vmatmul.mubr.bf16.vlgmr.msra.gmra.mrb[0].mxu1 %v270_v21 }
 0x101   : > { %840 = vmatpush3.bf16.msra.mxu1 %v997_v0  ;;  %855 = vmatprep.mubr.msk.bf16.mxu1 %vm970_vm0, %v969_v1 }
 0x102   : > { %841 = vmatprep.subr.bf16.mxu1 %v969_v1 }
 0x105   : > { %842 = vmatpush3.bf16.msra.mxu1 %v1005_v2 }
 0x106   : > { %843 = vmatprep.subr.bf16.mxu1 %v969_v1 }
 0x109   : > { %844 = vmatpush3.bf16.msra.mxu1 %v1018_v3 }
 0x10a   : > { %845 = vmatprep.subr.bf16.mxu1 %v969_v1 }
 0x10d   : > { %846 = vmatpush3.bf16.msra.mxu1 %v1029_v4 }
 0x10e   : > { %847 = vmatprep.subr.bf16.mxu1 %v969_v1 }
 0x111   : > { %848 = vmatpush3.bf16.msra.mxu1 %v1038_v6 }
 0x112   : > { %849 = vmatprep.subr.bf16.mxu1 %v969_v1 }
 0x115   : > { %850 = vmatpush3.bf16.msra.mxu1 %v1052_v8 }
 0x116   : > { %851 = vmatprep.subr.bf16.mxu1 %v969_v1 }
 0x119   : > { %852 = vmatpush3.bf16.msra.mxu1 %v1064_v9 }
 0x11a   : > { %853 = vmatprep.subr.bf16.mxu1 %v969_v1 }
 0x11d   : > { %854 = vmatpush3.bf16.msra.mxu1 %v1084_v11 }
 0x11e   : > { %879 = vmatprep.subr.bf16.mxu1 %v969_v1 }
 0x1d3   : > { %v305_v22 = vpop.f32.mrb[0].mxu1 }
 0x1d4   : > { %v817_v23 = vpop.f32.mrb[1].mxu1  ;;  %v312_v25 = vmax.f32 %v305_v22, 0.0 }
 0x1d5   : > { %v308_v24 = vpop.f32.mrb[2].mxu1 }
 0x1d6   : > { %v313_v26 = vmax.f32 %v308_v24, 0.0  ;;  %v818_v27 = vpop.f32.mrb[3].mxu1 }
 0x1d8   : > { %v314_v28 = vpack.c.bf16 %v313_v26, %v312_v25 }
 0x1da   : > { %836 = vmatmul.mubr.bf16.vlgmr.msra.gmra.mrb[4].mxu0 %v314_v28 }
 0x1db   : > { %860 = vmatpush3.bf16.msra.mxu0 %v997_v0  ;;  %875 = vmatprep.mubr.msk.bf16.mxu0 %vm970_vm0, %v969_v1 }
 0x1dc   : > { %861 = vmatprep.subr.bf16.mxu0 %v969_v1 }
 0x1df   : > { %862 = vmatpush3.bf16.msra.mxu0 %v1005_v2 }
 0x1e0   : > { %863 = vmatprep.subr.bf16.mxu0 %v969_v1 }
 0x1e3   : > { %864 = vmatpush3.bf16.msra.mxu0 %v1018_v3 }
 0x1e4   : > { %865 = vmatprep.subr.bf16.mxu0 %v969_v1 }
 0x1e7   : > { %866 = vmatpush3.bf16.msra.mxu0 %v1029_v4 }
 0x1e8   : > { %867 = vmatprep.subr.bf16.mxu0 %v969_v1 }
 0x1eb   : > { %868 = vmatpush3.bf16.msra.mxu0 %v1038_v6 }
 0x1ec   : > { %869 = vmatprep.subr.bf16.mxu0 %v969_v1 }
 0x1ef   : > { %870 = vmatpush3.bf16.msra.mxu0 %v1052_v8 }
 0x1f0   : > { %871 = vmatprep.subr.bf16.mxu0 %v969_v1 }
 0x1f3   : > { %872 = vmatpush3.bf16.msra.mxu0 %v1064_v9 }
 0x1f4   : > { %873 = vmatprep.subr.bf16.mxu0 %v969_v1 }
 0x1f7   : > { %874 = vmatpush3.bf16.msra.mxu0 %v1084_v11 }
 0x1f8   : > { %899 = vmatprep.subr.bf16.mxu0 %v969_v1 }
 0x2ad   : > { %v349_v29 = vpop.f32.mrb[4].mxu0 }
 0x2ae   : > { %v837_v30 = vpop.f32.mrb[5].mxu0  ;;  %v356_v32 = vmax.f32 %v349_v29, 0.0 }
 0x2af   : > { %v352_v31 = vpop.f32.mrb[6].mxu0 }
 0x2b0   : > { %v357_v33 = vmax.f32 %v352_v31, 0.0  ;;  %v838_v34 = vpop.f32.mrb[7].mxu0 }
 0x2b1   : > { %v159_v34 = vsel %vm1075_vm3, 0.0, %v1088_v13 }
 0x2b2   : > { %v358_v35 = vpack.c.bf16 %v357_v33, %v356_v32  ;;  %v158_v32 = vsel %vm1075_vm3, 0.0, %v1086_v12 }
 0x2b4   : > { %856 = vmatmul.mubr.bf16.vlgmr.msra.gmra.mrb[4].mxu1 %v358_v35 }
 0x2b5   : > { %880 = vmatpush3.bf16.msra.mxu1 %v997_v0  ;;  %895 = vmatprep.mubr.msk.bf16.mxu1 %vm970_vm0, %v969_v1 }
 0x2b6   : > { %881 = vmatprep.subr.bf16.mxu1 %v969_v1 }
 0x2b9   : > { %882 = vmatpush3.bf16.msra.mxu1 %v1005_v2 }
 0x2ba   : > { %883 = vmatprep.subr.bf16.mxu1 %v969_v1 }
 0x2bd   : > { %884 = vmatpush3.bf16.msra.mxu1 %v1018_v3 }
 0x2be   : > { %885 = vmatprep.subr.bf16.mxu1 %v969_v1 }
 0x2c1   : > { %886 = vmatpush3.bf16.msra.mxu1 %v1029_v4 }
 0x2c2   : > { %887 = vmatprep.subr.bf16.mxu1 %v969_v1 }
 0x2c5   : > { %888 = vmatpush3.bf16.msra.mxu1 %v1038_v6 }
 0x2c6   : > { %889 = vmatprep.subr.bf16.mxu1 %v969_v1 }
 0x2c9   : > { %890 = vmatpush3.bf16.msra.mxu1 %v1052_v8 }
 0x2ca   : > { %891 = vmatprep.subr.bf16.mxu1 %v969_v1 }
 0x2cd   : > { %892 = vmatpush3.bf16.msra.mxu1 %v1064_v9 }
 0x2ce   : > { %893 = vmatprep.subr.bf16.mxu1 %v969_v1 }
 0x2d1   : > { %894 = vmatpush3.bf16.msra.mxu1 %v1084_v11 }
 0x2d2   : > { %919 = vmatprep.subr.bf16.mxu1 %v969_v1 }
 0x387   : > { %v393_v36 = vpop.f32.mrb[4].mxu1 }
 0x388   : > { %v400_v37 = vmul.f32 0.5, %v393_v36  ;;  %v857_v38 = vpop.f32.mrb[5].mxu1  ;;  %v600_v45 = vmul.f32 %v393_v36, %v393_v36  ;;  %v604_v50 = vadd.f32 1.0, %v393_v36 }
 0x389   : > { %v396_v39 = vpop.f32.mrb[6].mxu1 }
 0x38a   : > { %v402_v40 = vmul.f32 1.442695, %v400_v37  ;;  %v401_v41 = vmul.f32 0.5, %v396_v39  ;;  %v858_v42 = vpop.f32.mrb[7].mxu1  ;;  %v601_v48 = vmul.f32 %v396_v39, %v396_v39  ;;  %v602_v53 = vsub.f32 0.0, %v600_v45 }
 0x38b   : > { %v605_v56 = vadd.f32 1.0, %v396_v39 }
 0x38c   : > { %957 = vpow2.f32 %v402_v40  ;;  %v404_v43 = vmul.f32 1.442695, %v401_v41  ;;  %v603_v58 = vsub.f32 0.0, %v601_v48 }
 0x38e   : > { %959 = vpow2.f32 %v404_v43 }
 0x396   : > { %v958_v46 = vpop.eup %957 }
 0x397   : > { %v406_v49 = vmul.f32 %v958_v46, %v160_v44  ;;  %v606_v51 = vmul.f32 %v958_v46, %v958_v46 }
 0x398   : > { %v960_v52 = vpop.eup %959 }
 0x399   : > { %v608_v54 = vsub.f32 %v604_v50, %v606_v51  ;;  %v407_v55 = vmul.f32 %v960_v52, %v161_v47  ;;  %v607_v57 = vmul.f32 %v960_v52, %v960_v52  ;;  %v408_v59 = vsel %vm1075_vm3, %v406_v49, %v393_v36 }
 0x39b   : > { %v409_v60 = vsel %vm1075_vm3, %v407_v55, %v396_v39  ;;  %v609_v61 = vsub.f32 %v605_v56, %v607_v57  ;;  %v1184_v62 = vsel %vm599_vm6, %v602_v53, %v608_v54 }
 0x39c   : > { %v410_v63 = vpack.c.bf16 %v409_v60, %v408_v59 }
 0x39d   : > { %v1186_v14 = vsel %vm599_vm6, %v603_v58, %v609_v61 }
 0x39e   : > { %876 = vmatmul.mubr.bf16.vlgmr.msra.gmra.mrb[8].mxu0 %v410_v63 }
 0x39f   : > { %900 = vmatpush3.bf16.msra.mxu0 %v997_v0  ;;  %915 = vmatprep.mubr.msk.bf16.mxu0 %vm970_vm0, %v969_v1 }
 0x3a0   : > { %901 = vmatprep.subr.bf16.mxu0 %v969_v1 }
 0x3a3   : > { %902 = vmatpush3.bf16.msra.mxu0 %v1005_v2 }
 0x3a4   : > { %903 = vmatprep.subr.bf16.mxu0 %v969_v1 }
 0x3a7   : > { %904 = vmatpush3.bf16.msra.mxu0 %v1018_v3 }
 0x3a8   : > { %905 = vmatprep.subr.bf16.mxu0 %v969_v1 }
 0x3ab   : > { %906 = vmatpush3.bf16.msra.mxu0 %v1029_v4 }
 0x3ac   : > { %907 = vmatprep.subr.bf16.mxu0 %v969_v1 }
 0x3af   : > { %908 = vmatpush3.bf16.msra.mxu0 %v1038_v6 }
 0x3b0   : > { %909 = vmatprep.subr.bf16.mxu0 %v969_v1 }
 0x3b3   : > { %910 = vmatpush3.bf16.msra.mxu0 %v1052_v8 }
 0x3b4   : > { %911 = vmatprep.subr.bf16.mxu0 %v969_v1 }
 0x3b7   : > { %912 = vmatpush3.bf16.msra.mxu0 %v1064_v9 }
 0x3b8   : > { %913 = vmatprep.subr.bf16.mxu0 %v969_v1 }
 0x3bb   : > { %914 = vmatpush3.bf16.msra.mxu0 %v1084_v11 }
 0x471   : > { %v445_v15 = vpop.f32.mrb[8].mxu0 }
 0x472   : > { %v877_v16 = vpop.f32.mrb[9].mxu0  ;;  %v452_v18 = vmax.f32 %v445_v15, 0.0 }
 0x473   : > { %v448_v17 = vpop.f32.mrb[10].mxu0 }
 0x474   : > { %v453_v19 = vmax.f32 %v448_v17, 0.0  ;;  %v878_v20 = vpop.f32.mrb[11].mxu0 }
 0x476   : > { %v454_v21 = vpack.c.bf16 %v453_v19, %v452_v18 }
 0x478   : > { %896 = vmatmul.mubr.bf16.vlgmr.msra.gmra.mrb[8].mxu1 %v454_v21 }
 0x479   : > { %920 = vmatpush3.bf16.msra.mxu1 %v997_v0  ;;  %935 = vmatprep.mubr.msk.bf16.mxu1 %vm970_vm0, %v969_v1 }
 0x47a   : > { %921 = vmatprep.subr.bf16.mxu1 %v969_v1 }
 0x47d   : > { %922 = vmatpush3.bf16.msra.mxu1 %v1005_v2 }
 0x47e   : > { %923 = vmatprep.subr.bf16.mxu1 %v969_v1 }
 0x481   : > { %924 = vmatpush3.bf16.msra.mxu1 %v1018_v3 }
 0x482   : > { %925 = vmatprep.subr.bf16.mxu1 %v969_v1 }
 0x485   : > { %926 = vmatpush3.bf16.msra.mxu1 %v1029_v4 }
 0x486   : > { %927 = vmatprep.subr.bf16.mxu1 %v969_v1 }
 0x489   : > { %928 = vmatpush3.bf16.msra.mxu1 %v1038_v6 }
 0x48a   : > { %929 = vmatprep.subr.bf16.mxu1 %v969_v1 }
 0x48d   : > { %930 = vmatpush3.bf16.msra.mxu1 %v1052_v8 }
 0x48e   : > { %931 = vmatprep.subr.bf16.mxu1 %v969_v1 }
 0x491   : > { %932 = vmatpush3.bf16.msra.mxu1 %v1064_v9 }
 0x492   : > { %933 = vmatprep.subr.bf16.mxu1 %v969_v1  ;;  %v151_v1 = vshrl.u32 %v148_v5, 7 }
 0x494   : > { %v152_v29 = vadd.s32 8, %v151_v1 }
 0x495   : > { %934 = vmatpush3.bf16.msra.mxu1 %v1084_v11  ;;  %v585_v11 = vstv %s704_s4 }
 0x496   : > { %v586_v30 = vadd.s32 %v585_v11, %v151_v1  ;;  %v587_v31 = vadd.s32 %v585_v11, %v152_v29 }
 0x498   : > { %vm588_vm8 = vcmp.lt.s32.totalorder %v586_v30, 20  ;;  %vm589_vm10 = vcmp.lt.s32.totalorder %v587_v31, 20 }
 0x499   : > { %vm1232_vm12 = vmand %vm588_vm8, %vm613_vm9 }
 0x49a   : > { %vm1239_vm13 = vmand %vm589_vm10, %vm613_vm9  ;;  %v616_v7 = vsel %vm1232_vm12, %v1184_v62, 0.0 }
 0x49b   : > { %vm593_vm14 = vmand %vm588_vm8, %vm592_vm11  ;;  %v617_v13 = vsel %vm1239_vm13, %v1186_v14, 0.0  ;;  %v620_v43 = vmul.f32 -0.000625, %v616_v7 }
 0x49c   : > { %vm594_vm15 = vmand %vm589_vm10, %vm592_vm11  ;;  %v621_v47 = vmul.f32 -0.000625, %v617_v13 }
 0x54b   : > { %v489_v0 = vpop.f32.mrb[8].mxu1 }
 0x54c   : > { %v897_v2 = vpop.f32.mrb[9].mxu1  ;;  %v496_v4 = vmax.f32 %v489_v0, 0.0 }
 0x54d   : > { %v492_v3 = vpop.f32.mrb[10].mxu1 }
 0x54e   : > { %v497_v22 = vmax.f32 %v492_v3, 0.0  ;;  %v898_v23 = vpop.f32.mrb[11].mxu1 }
 0x550   : > { %v498_v6 = vpack.c.bf16 %v497_v22, %v496_v4 }
 0x552   : > { %916 = vmatmul.mubr.bf16.vlgmr.msra.gmra.mrb[12].mxu0 %v498_v6 }
 0x625   : > { %v533_v24 = vpop.f32.mrb[12].mxu0 }
 0x626   : > { %v917_v25 = vpop.f32.mrb[13].mxu0  ;;  %v540_v26 = vmax.f32 %v533_v24, 0.0 }
 0x627   : > { %v536_v8 = vpop.f32.mrb[14].mxu0 }
 0x628   : > { %v541_v27 = vmax.f32 %v536_v8, 0.0  ;;  %v918_v28 = vpop.f32.mrb[15].mxu0 }
 0x62a   : > { %v542_v9 = vpack.c.bf16 %v541_v27, %v540_v26 }
 0x62c   : > { %936 = vmatmul.mubr.bf16.vlgmr.msra.gmra.mrb[12].mxu1 %v542_v9 }
 0x6ff   : > { %v577_v5 = vpop.f32.mrb[12].mxu1 }
 0x700   : > { %v590_v35 = vsub.f32 %v158_v32, %v577_v5  ;;  %v937_v36 = vpop.f32.mrb[13].mxu1 }
 0x701   : > { %v580_v12 = vpop.f32.mrb[14].mxu1 }
 0x702   : > { %v595_v38 = vmul.f32 %v590_v35, %v590_v35  ;;  %v591_v39 = vsub.f32 %v159_v34, %v580_v12  ;;  %v938_v40 = vpop.f32.mrb[15].mxu1 }
 0x704   : > { %v597_v41 = vsel %vm593_vm14, %v595_v38, 0.0  ;;  %v596_v10 = vmul.f32 %v591_v39, %v591_v39 }
 0x705   : > { %v618_v42 = vmul.f32 0.016666668, %v597_v41 }
 0x706   : > { %v598_v44 = vsel %vm594_vm15, %v596_v10, 0.0 }
 0x707   : > { %v622_v45 = vadd.f32 %v620_v43, %v618_v42  ;;  %v619_v46 = vmul.f32 0.016666668, %v598_v44 }
 0x709   : > { %624 = vst [vmem:[%s145_s7] sm:$0xff] %v622_v45  ;;  %v623_v48 = vadd.f32 %v621_v47, %v619_v46 }
 0x70b   : > { %625 = vst [vmem:[%s145_s7 + $0x8] sm:$0xff] %v623_v48 }
 0x70c PF: > { %s12_s9 = sadd.s32 1, %s967_s9  }
 0x70d   : > { %p9_p4 = scmp.ge.s32.totalorder %s12_s9, 4  }
 0x70f   :  { %11 = sbr.rel (!%p9_p4) target bundleno = 1 (0x1), region = 58 }

</bundles_post_ra>
